<compile_context>
chip_gen: v5e
topology: v5e:2x2
jax: 0.10.0
libtpu: 0.0.40
codegen_flags: <defaults>
</compile_context>

<pallas_src>
import functools

import jax
import jax.numpy as jnp
from jax.experimental import pallas as pl
from jax.experimental.pallas import tpu as pltpu


def actor_normal_kernel(x_ref, w1_ref, b1_ref, wh_ref, bh_ref, out_ref, *,
                        action_dim):
    # hidden layer: (Bt, S) @ (S, Hpad) -> (Bt, Hpad), tanh. Padded lanes of
    # W1/b1 are zero so tanh gives exactly 0 there.
    a = jnp.tanh(
        jnp.dot(x_ref[...], w1_ref[...], preferred_element_type=jnp.float32)
        + b1_ref[...]
    )
    # fused heads: (Bt, Hpad) @ (Hpad, out_w) -> (Bt, out_w). Zero rows of the
    # fused head weight (padded H) contribute nothing. One MXU pass covers
    # both mu and sigma.
    logits = (
        jnp.dot(a, wh_ref[...], preferred_element_type=jnp.float32)
        + bh_ref[...]
    )
    lane = jax.lax.broadcasted_iota(jnp.int32, logits.shape, 1)
    # lanes [0, A)      -> mu    = sigmoid(logits)  (as 0.5*tanh(0.5x)+0.5: one
    #                      EUP op instead of exp+recip — exact identity)
    # lanes [A, 2A)     -> sigma = softplus(logits)
    # lanes [2A, out_w) -> padding (only present in the lane-dense 128-wide
    #                      output mode), discarded by the wrapper.
    sig = 0.5 * jnp.tanh(0.5 * logits) + 0.5
    sp = jax.nn.softplus(logits)
    out_ref[...] = jnp.where(lane < action_dim, sig, sp)


def init_params(key, state_dim, action_dim, nn_width):
    """Deterministic init (uniform, roughly like PyTorch's Linear default).
    Weights stored transposed vs. PyTorch, i.e. W:(in, out), so y = x @ W + b."""
    ks = jax.random.split(key, 6)

    def lin(kw, kb, fan_in, fan_out):
        bound = 1.0 / jnp.sqrt(fan_in)
        w = jax.random.uniform(kw, (fan_in, fan_out), jnp.float32, -bound, bound)
        b = jax.random.uniform(kb, (1, fan_out), jnp.float32, -bound, bound)
        return w, b

    w1, b1 = lin(ks[0], ks[1], state_dim, nn_width)
    wmu, bmu = lin(ks[2], ks[3], nn_width, action_dim)
    wsig, bsig = lin(ks[4], ks[5], nn_width, action_dim)
    return dict(w1=w1, b1=b1, wmu=wmu, bmu=bmu, wsig=wsig, bsig=bsig)


def fuse_head_params(params, lane_pad=128):
    """One-time layout work (outside the per-call path):
      * pad hidden dim H to a multiple of 128 lanes (W1, b1, head rows),
      * concatenate the two heads into one weight,
      * build both a lane-dense 128-wide head (tiny-B regime) and a narrow
        2A-wide head (large-B regime, 16x fewer output HBM bytes)."""
    w1, b1 = params["w1"], params["b1"]
    wmu, wsig = params["wmu"], params["wsig"]
    bmu, bsig = params["bmu"], params["bsig"]
    S, H = w1.shape
    A = wmu.shape[1]
    two_a = 2 * A

    h_pad = ((H + lane_pad - 1) // lane_pad) * lane_pad
    out_pad = max(lane_pad, ((two_a + lane_pad - 1) // lane_pad) * lane_pad)

    w1_p = jnp.zeros((S, h_pad), jnp.float32).at[:, :H].set(w1)
    b1_p = jnp.zeros((1, h_pad), jnp.float32).at[:, :H].set(b1)

    # Narrow (2A-wide) fused head: contraction rows padded to h_pad.
    w_heads_n = (jnp.zeros((h_pad, two_a), jnp.float32)
                 .at[:H, :A].set(wmu)
                 .at[:H, A:two_a].set(wsig))
    b_heads_n = (jnp.zeros((1, two_a), jnp.float32)
                 .at[:, :A].set(bmu)
                 .at[:, A:two_a].set(bsig))

    # Lane-dense (>=128-wide) fused head for the tiny-B regime.
    w_heads_d = jnp.zeros((h_pad, out_pad), jnp.float32).at[:, :two_a].set(w_heads_n)
    b_heads_d = jnp.zeros((1, out_pad), jnp.float32).at[:, :two_a].set(b_heads_n)

    return dict(w1=w1_p, b1=b1_p,
                w_heads_dense=w_heads_d, b_heads_dense=b_heads_d,
                w_heads_narrow=w_heads_n, b_heads_narrow=b_heads_n,
                action_dim=A)


def actor_normal_forward(state, fused, *, block_rows=512, narrow_out=None):
    """state: (B, state_dim) f32.  fused: output of fuse_head_params.
    Returns (mu, sigma), each (B, action_dim) f32."""
    B, S = state.shape
    A = int(fused["action_dim"])
    h_pad = fused["w1"].shape[1]

    # At large B the kernel is output-writeback bound: store only the 2A
    # useful lanes. At tiny B keep the unmasked lane-dense 128-wide store.
    if narrow_out is None:
        narrow_out = B >= 2048
    if narrow_out:
        w_heads, b_heads = fused["w_heads_narrow"], fused["b_heads_narrow"]
    else:
        w_heads, b_heads = fused["w_heads_dense"], fused["b_heads_dense"]
    out_w = w_heads.shape[1]

    # cdiv-based batch tiling. block_rows is a multiple of 8 (sublane rule);
    # when B <= block_rows the block is the full batch dim (always legal).
    assert block_rows % 8 == 0
    block_b = min(B, block_rows)
    grid_b = pl.cdiv(B, block_b)
    b_padded = grid_b * block_b
    if b_padded != B:
        state = jnp.pad(state, ((0, b_padded - B), (0, 0)))

    # Explicit VMEM budget from the tile footprint (double-buffered tiles +
    # weights), with headroom — keeps the tiling portable to v7x's 64 MiB VMEM.
    f32 = 4
    tile_bytes = (2 * block_b * S * f32                 # state, double-buffered
                  + 2 * block_b * out_w * f32           # output, double-buffered
                  + 2 * (S * h_pad + h_pad) * f32       # W1 + b1
                  + 2 * (h_pad * out_w + out_w) * f32)  # fused head W + b
    vmem_limit = min(64 * 1024 * 1024, max(4 * 1024 * 1024, 2 * tile_bytes))

    out = pl.pallas_call(
        functools.partial(actor_normal_kernel, action_dim=A),
        out_shape=jax.ShapeDtypeStruct((b_padded, out_w), jnp.float32),
        grid=(grid_b,),
        in_specs=[
            pl.BlockSpec((block_b, S), lambda i: (i, 0)),   # state tile
            pl.BlockSpec((S, h_pad), lambda i: (0, 0)),     # W1 (H padded)
            pl.BlockSpec((1, h_pad), lambda i: (0, 0)),     # b1
            pl.BlockSpec((h_pad, out_w), lambda i: (0, 0)), # fused head W
            pl.BlockSpec((1, out_w), lambda i: (0, 0)),     # fused head b
        ],
        out_specs=pl.BlockSpec((block_b, out_w), lambda i: (i, 0)),
        compiler_params=pltpu.CompilerParams(
            dimension_semantics=("parallel",),
            vmem_limit_bytes=vmem_limit,
            # If DMA is still exposed at very large B, bump pipeline depth on
            # the state/out specs with pipeline_mode=pl.Buffered(3); MXU is
            # nowhere near the bottleneck, so no effort is spent there.
        ),
    )(state, fused["w1"], fused["b1"], w_heads, b_heads)

    mu = out[:B, :A]
    sigma = out[:B, A:2 * A]
    return mu, sigma


def _reference_forward(state, params):
    a = jnp.tanh(state @ params["w1"] + params["b1"])
    mu = jax.nn.sigmoid(a @ params["wmu"] + params["bmu"])
    sigma = jax.nn.softplus(a @ params["wsig"] + params["bsig"])
    return mu, sigma


if __name__ == "__main__":
    key = jax.random.PRNGKey(0)
    k_params, k_state, k_state2 = jax.random.split(key, 3)

    B, state_dim, action_dim, nn_width = 8, 16, 4, 32
    params = init_params(k_params, state_dim, action_dim, nn_width)
    fused = fuse_head_params(params)

    # --- tiny-B RL-inference regime (lane-dense 128-wide output path) ---
    state = jax.random.normal(k_state, (B, state_dim), dtype=jnp.float32)
    mu, sigma = actor_normal_forward(state, fused)
    jax.block_until_ready((mu, sigma))

    mu_ref, sig_ref = _reference_forward(state, params)
    assert mu.shape == (B, action_dim) and sigma.shape == (B, action_dim)
    assert jnp.allclose(mu, mu_ref, atol=1e-5), "mu mismatch (small B)"
    assert jnp.allclose(sigma, sig_ref, atol=1e-5), "sigma mismatch (small B)"
    assert bool(jnp.all(sigma > 0)), "softplus output must be positive"

    # --- multi-block / tail-padded / narrow-output path (still small data) ---
    B2 = 600  # > block_rows, not a multiple of it -> exercises cdiv + padding
    state2 = jax.random.normal(k_state2, (B2, state_dim), dtype=jnp.float32)
    mu2, sigma2 = actor_normal_forward(state2, fused, narrow_out=True)
    jax.block_until_ready((mu2, sigma2))

    mu2_ref, sig2_ref = _reference_forward(state2, params)
    assert mu2.shape == (B2, action_dim) and sigma2.shape == (B2, action_dim)
    assert jnp.allclose(mu2, mu2_ref, atol=1e-5), "mu mismatch (tiled B)"
    assert jnp.allclose(sigma2, sig2_ref, atol=1e-5), "sigma mismatch (tiled B)"

    print("KERNEL_OK")
</pallas_src>

<mosaic_0001>
module attributes {stable_mosaic.version = 11 : i64} {
  func.func @actor_normal_kernel(%arg0: i32, %arg1: memref<8x16xf32, #tpu.memory_space<vmem>>, %arg2: memref<16x128xf32, #tpu.memory_space<vmem>>, %arg3: memref<1x128xf32, #tpu.memory_space<vmem>>, %arg4: memref<128x128xf32, #tpu.memory_space<vmem>>, %arg5: memref<1x128xf32, #tpu.memory_space<vmem>>, %arg6: memref<8x128xf32, #tpu.memory_space<vmem>>) attributes {dimension_semantics = [#tpu.dimension_semantics<parallel>], iteration_bounds = array<i64: 1>, scalar_prefetch = 0 : i64, scratch_operands = 0 : i64, tpu.core_type = #tpu.core_type<tc>, window_params = [{transform_indices = @transform_0, window_bounds = array<i64: 8, 16>}, {pipeline_mode = #tpu.pipeline_mode<synchronous>, transform_indices = @transform_1, window_bounds = array<i64: 16, 128>}, {pipeline_mode = #tpu.pipeline_mode<synchronous>, transform_indices = @transform_2, window_bounds = array<i64: 1, 128>}, {pipeline_mode = #tpu.pipeline_mode<synchronous>, transform_indices = @transform_3, window_bounds = array<i64: 128, 128>}, {pipeline_mode = #tpu.pipeline_mode<synchronous>, transform_indices = @transform_4, window_bounds = array<i64: 1, 128>}, {transform_indices = @transform_5, window_bounds = array<i64: 8, 128>}]} {
    %c0 = arith.constant 0 : index
    %c0_0 = arith.constant 0 : index
    %0 = vector.load %arg1[%c0, %c0_0] : memref<8x16xf32, #tpu.memory_space<vmem>>, vector<8x16xf32>
    %c0_1 = arith.constant 0 : index
    %c0_2 = arith.constant 0 : index
    %1 = vector.load %arg2[%c0_1, %c0_2] : memref<16x128xf32, #tpu.memory_space<vmem>>, vector<16x128xf32>
    %cst = arith.constant dense<0.000000e+00> : vector<8x128xf32>
    %2 = tpu.matmul %0, %1, %cst {dimension_numbers = #tpu.dot_dimension_numbers<[1], [0], [0], [1], [0, 0, 1, 1], [], []>} : vector<8x16xf32>, vector<16x128xf32>, vector<8x128xf32> -> vector<8x128xf32>
    %c0_3 = arith.constant 0 : index
    %c0_4 = arith.constant 0 : index
    %3 = vector.load %arg3[%c0_3, %c0_4] : memref<1x128xf32, #tpu.memory_space<vmem>>, vector<1x128xf32>
    %4 = vector.broadcast %3 : vector<1x128xf32> to vector<8x128xf32>
    %5 = arith.addf %2, %4 : vector<8x128xf32>
    %6 = math.tanh %5 : vector<8x128xf32>
    %c0_5 = arith.constant 0 : index
    %c0_6 = arith.constant 0 : index
    %7 = vector.load %arg4[%c0_5, %c0_6] : memref<128x128xf32, #tpu.memory_space<vmem>>, vector<128x128xf32>
    %cst_7 = arith.constant dense<0.000000e+00> : vector<8x128xf32>
    %8 = tpu.matmul %6, %7, %cst_7 {dimension_numbers = #tpu.dot_dimension_numbers<[1], [0], [0], [1], [0, 0, 1, 1], [], []>} : vector<8x128xf32>, vector<128x128xf32>, vector<8x128xf32> -> vector<8x128xf32>
    %c0_8 = arith.constant 0 : index
    %c0_9 = arith.constant 0 : index
    %9 = vector.load %arg5[%c0_8, %c0_9] : memref<1x128xf32, #tpu.memory_space<vmem>>, vector<1x128xf32>
    %10 = vector.broadcast %9 : vector<1x128xf32> to vector<8x128xf32>
    %11 = arith.addf %8, %10 : vector<8x128xf32>
    %12 = tpu.iota {dimensions = array<i32: 1>} : vector<8x128xi32>
    %cst_10 = arith.constant 5.000000e-01 : f32
    %13 = vector.broadcast %cst_10 : f32 to vector<8x128xf32>
    %14 = arith.mulf %13, %11 : vector<8x128xf32>
    %15 = math.tanh %14 : vector<8x128xf32>
    %cst_11 = arith.constant 5.000000e-01 : f32
    %16 = vector.broadcast %cst_11 : f32 to vector<8x128xf32>
    %17 = arith.mulf %16, %15 : vector<8x128xf32>
    %cst_12 = arith.constant 5.000000e-01 : f32
    %18 = vector.broadcast %cst_12 : f32 to vector<8x128xf32>
    %19 = arith.addf %17, %18 : vector<8x128xf32>
    %cst_13 = arith.constant 0.000000e+00 : f32
    %20 = vector.broadcast %cst_13 : f32 to vector<8x128xf32>
    %21 = arith.maximumf %11, %20 : vector<8x128xf32>
    %22 = vector.broadcast %cst_13 : f32 to vector<8x128xf32>
    %23 = arith.subf %11, %22 : vector<8x128xf32>
    %24 = arith.cmpf one, %23, %23 : vector<8x128xf32>
    %25 = vector.broadcast %cst_13 : f32 to vector<8x128xf32>
    %26 = arith.addf %11, %25 : vector<8x128xf32>
    %27 = math.absf %23 : vector<8x128xf32>
    %cst_14 = arith.constant 0.000000e+00 : f32
    %28 = vector.broadcast %cst_14 : f32 to vector<8x128xf32>
    %29 = arith.subf %28, %27 : vector<8x128xf32>
    %30 = math.exp %29 : vector<8x128xf32>
    %31 = math.log1p %30 : vector<8x128xf32>
    %32 = arith.addf %21, %31 : vector<8x128xf32>
    %33 = arith.select %24, %26, %32 : vector<8x128xi1>, vector<8x128xf32>
    %c4_i32 = arith.constant 4 : i32
    %34 = vector.broadcast %c4_i32 : i32 to vector<8x128xi32>
    %35 = arith.cmpi slt, %12, %34 : vector<8x128xi32>
    %36 = arith.select %35, %19, %33 : vector<8x128xi1>, vector<8x128xf32>
    %c0_15 = arith.constant 0 : index
    %c0_16 = arith.constant 0 : index
    %37 = vector.load %arg6[%c0_15, %c0_16] : memref<8x128xf32, #tpu.memory_space<vmem>>, vector<8x128xf32>
    tpu.vector_store %arg6[%c0_15, %c0_16], %36 {strides = array<i32>} : memref<8x128xf32, #tpu.memory_space<vmem>>, vector<8x128xf32>,
    return
  }
  func.func @transform_0(%arg0: i32) -> (i32, i32) {
    %c0_i32 = arith.constant 0 : i32
    %c0_i32_0 = arith.constant 0 : i32
    return %arg0, %c0_i32 : i32, i32
  }
  func.func @transform_1(%arg0: i32) -> (i32, i32) {
    %c0_i32 = arith.constant 0 : i32
    %c0_i32_0 = arith.constant 0 : i32
    %c0_i32_1 = arith.constant 0 : i32
    return %c0_i32, %c0_i32_0 : i32, i32
  }
  func.func @transform_2(%arg0: i32) -> (i32, i32) {
    %c0_i32 = arith.constant 0 : i32
    %c0_i32_0 = arith.constant 0 : i32
    %c0_i32_1 = arith.constant 0 : i32
    return %c0_i32, %c0_i32_0 : i32, i32
  }
  func.func @transform_3(%arg0: i32) -> (i32, i32) {
    %c0_i32 = arith.constant 0 : i32
    %c0_i32_0 = arith.constant 0 : i32
    %c0_i32_1 = arith.constant 0 : i32
    return %c0_i32, %c0_i32_0 : i32, i32
  }
  func.func @transform_4(%arg0: i32) -> (i32, i32) {
    %c0_i32 = arith.constant 0 : i32
    %c0_i32_0 = arith.constant 0 : i32
    %c0_i32_1 = arith.constant 0 : i32
    return %c0_i32, %c0_i32_0 : i32, i32
  }
  func.func @transform_5(%arg0: i32) -> (i32, i32) {
    %c0_i32 = arith.constant 0 : i32
    %c0_i32_0 = arith.constant 0 : i32
    return %arg0, %c0_i32 : i32, i32
  }
}

</mosaic_0001>

<bundles_post_ra>
// kernel: tpu_custom_call.1
= control target key start
LH: loop header
LB: loop body
LE: loop exit
PB: predicated region body
PF: predicated region fallthrough
CT: control target
= control target key end

     0   :  { %10 = vsyncpa [#allocation3], 0  ;;  %s356_s0 = inlined_call_operand.hbm [shape: f32[8,16], index: 0, kind: input, shape index: {}]   ;;  %s357_s1 = inlined_call_operand.hbm [shape: f32[16,128], index: 1, kind: input, shape index: {}]   ;;  %s358_s2 = inlined_call_operand.vmem [shape: f32[1,128], index: 2, kind: input, shape index: {}]   ;;  %s359_s3 = inlined_call_operand.hbm [shape: f32[128,128], index: 3, kind: input, shape index: {}]   ;;  %s360_s4 = inlined_call_operand.vmem [shape: f32[1,128], index: 4, kind: input, shape index: {}]   ;;  %s361_s5 = inlined_call_operand.hbm [shape: f32[8,128], index: 5, kind: output, shape index: {}]  }
   0x1   :  { %11 = vsyncpa [#allocation6], 0  ;;  %s28_s20 = sshll.u32 %s357_s1, 4  ;;  %s29_s20 = int_to_ptr.hbm [resolvable:$true] %s28_s20 }
   0x2   :  { %12 = vsyncpa [#allocation4], 0  ;;  %s302_s21 = smov [#allocation5]   ;;  %s18_s25 = sshll.u32 %s356_s0, 4  ;;  %s19_s25 = int_to_ptr.hbm [resolvable:$true] %s18_s25 }
   0x3   :  { %s30_s22 = sshll.u32 %s302_s21, 4  ;;  %s303_s26 = smov 128   ;;  %s31_s22 = int_to_ptr.vmem [resolvable:$true] %s30_s22 }
   0x4   :  { %s304_s27 = smov 8   ;;  %s305_s28 = smov [#allocation2]  }
   0x5   :  { %36 = dma.hbm_to_vmem [thread:$0]  %s29_s20, 256, %s31_s22, [#allocation6], %s303_s26, %s303_s26, %s304_s27  }
   0x6   :  { %s20_s29 = sshll.u32 %s305_s28, 4  ;;  %s43_s7 = sshll.u32 %s359_s3, 4  ;;  %s21_s29 = int_to_ptr.vmem [resolvable:$true] %s20_s29  ;;  %s44_s7 = int_to_ptr.hbm [resolvable:$true] %s43_s7 }
   0x7   :  { %23 = dma.hbm_to_vmem [thread:$0]  %s19_s25, 128, %s21_s29, [#allocation3]  }
   0x8   :  { %s306_s1 = smov [#allocation7]  }
   0x9   :  { %s45_s8 = sshll.u32 %s306_s1, 4  ;;  %s46_s8 = int_to_ptr.vmem [resolvable:$true] %s45_s8 }
   0xa   :  { %51 = dma.hbm_to_vmem [thread:$0]  %s44_s7, 2048, %s46_s8, [#allocation6], %s303_s26, %s303_s26, %s304_s27  }
   0xb   :  { %296 = dma.done.wait [#allocation3], 128  }
   0xc   :  { %297 = vsyncadd [#allocation3], 4294967168 }
   0xd   :  { %298 = dma.done.wait [#allocation6], 2304  }
   0xe   :  { %299 = vsyncadd [#allocation6], 4294964992  ;;  %v68_v0 = vld [vmem:[#allocation5 + $0x8] sm:$0xff]  ;;  %v67_v1 = vld [vmem:[#allocation5] sm:$0xff]  ;;  %vm73_vm0 = vcmask 130048   ;;  %v138_v33 = vlaneseq  ;;  %s172_s13 = sshll.u32 %s361_s5, 4  ;;  %s173_s13 = int_to_ptr.hbm [resolvable:$true] %s172_s13 }
   0xf   :  { %91 = vmatpush.msra.mxu0 %v68_v0  ;;  %v66_v2 = vld [vmem:[#allocation2] sm:$0xff]  ;;  %v113_v3 = vld [vmem:[#allocation7 + $0x78] sm:$0xff]  ;;  %v112_v4 = vld [vmem:[#allocation7 + $0x70] sm:$0xff] }
  0x10   :  { %118 = vmatpush.msra.mxu1 %v113_v3  ;;  %v111_v5 = vld [vmem:[#allocation7 + $0x68] sm:$0xff]  ;;  %v110_v6 = vld [vmem:[#allocation7 + $0x60] sm:$0xff]  ;;  %v109_v7 = vld [vmem:[#allocation7 + $0x58] sm:$0xff]  ;;  %v139_v38 = vand.u32 127, %v138_v33 }
  0x11   :  { %92 = vmatpush.msra.mxu0 %v67_v1  ;;  %v108_v8 = vld [vmem:[#allocation7 + $0x50] sm:$0xff]  ;;  %v107_v9 = vld [vmem:[#allocation7 + $0x48] sm:$0xff]  ;;  %v106_v10 = vld [vmem:[#allocation7 + $0x40] sm:$0xff] }
  0x12   :  { %183 = vmatmul.msk.f32.vlgmr.msra.gmra.mxu0 %vm73_vm0, %v66_v2  ;;  %119 = vmatpush.msra.mxu1 %v112_v4  ;;  %v105_v11 = vld [vmem:[#allocation7 + $0x38] sm:$0xff]  ;;  %v104_v12 = vld [vmem:[#allocation7 + $0x30] sm:$0xff]  ;;  %v103_v13 = vld [vmem:[#allocation7 + $0x28] sm:$0xff]  ;;  %vm162_vm2 = vcmp.lt.s32.totalorder %v139_v38, 4 }
  0x13   :  { %v102_v14 = vld [vmem:[#allocation7 + $0x20] sm:$0xff]  ;;  %v101_v15 = vld [vmem:[#allocation7 + $0x18] sm:$0xff]  ;;  %v100_v16 = vld [vmem:[#allocation7 + $0x10] sm:$0xff] }
  0x14   :  { %120 = vmatpush.msra.mxu1 %v111_v5  ;;  %v99_v17 = vld [vmem:[#allocation7 + $0x8] sm:$0xff]  ;;  %v98_v18 = vld [vmem:[#allocation7] sm:$0xff] }
  0x15   :  { %v190_v19 = vld [vmem:[%s358_s2] ss:$0 sm:$0xff]  ;;  %s307_s2 = smov [#allocation8]  }
  0x16   :  { %121 = vmatpush.msra.mxu1 %v110_v6  ;;  %v191_v23 = vld [vmem:[%s360_s4] ss:$0 sm:$0xff]  ;;  %s170_s4 = sshll.u32 %s307_s2, 4  ;;  %s171_s4 = int_to_ptr.vmem [resolvable:$true] %s170_s4 }
  0x18   :  { %122 = vmatpush.msra.mxu1 %v109_v7 }
  0x1a   :  { %123 = vmatpush.msra.mxu1 %v108_v8 }
  0x1c   :  { %124 = vmatpush.msra.mxu1 %v107_v9 }
  0x1e   :  { %125 = vmatpush.msra.mxu1 %v106_v10 }
  0x20   :  { %126 = vmatpush.msra.mxu1 %v105_v11 }
  0x22   :  { %127 = vmatpush.msra.mxu1 %v104_v12 }
  0x24   :  { %128 = vmatpush.msra.mxu1 %v103_v13 }
  0x26   :  { %129 = vmatpush.msra.mxu1 %v102_v14 }
  0x28   :  { %130 = vmatpush.msra.mxu1 %v101_v15 }
  0x2a   :  { %131 = vmatpush.msra.mxu1 %v100_v16 }
  0x2c   :  { %132 = vmatpush.msra.mxu1 %v99_v17 }
  0x2e   :  { %133 = vmatpush.msra.mxu1 %v98_v18 }
  0x8f   :  { %v94_v20 = vpop.f32.mrf.mxu0 }
  0x90   :  { %v95_v21 = vadd.f32 %v190_v19, %v94_v20 }
  0x92   :  { %192 = vtanh.f32 %v95_v21 }
  0x98   :  { %v193_v22 = vpop.eup %192 }
  0x99   :  { %134 = vmatmul.f32.vlgmr.msra.gmra.mxu1 %v193_v22 }
 0x116   :  { %v135_v24 = vpop.f32.mrf.mxu1 }
 0x117   :  { %v136_v25 = vadd.f32 %v191_v23, %v135_v24 }
 0x119   :  { %v147_v26 = vand.u32 2147483647, %v136_v25  ;;  %v140_v29 = vmul.f32 0.5, %v136_v25  ;;  %v144_v42 = vmax.f32 %v136_v25, 0.0  ;;  %vm145_vm3 = vcmp.ne.f32.partialorder %v136_v25, %v136_v25 }
 0x11b   :  { %v148_v27 = vsub.f32 0.0, %v147_v26 }
 0x11d   :  { %v149_v28 = vmul.f32 1.442695, %v148_v27 }
 0x11f   :  { %194 = vpow2.f32 %v149_v28 }
 0x120   :  { %196 = vtanh.f32 %v140_v29 }
 0x125   :  { %v195_v30 = vpop.eup %194 }
 0x126   :  { %v151_v31 = vadd.f32 1.0, %v195_v30  ;;  %v154_v32 = vmul.f32 -0.5, %v195_v30  ;;  %v197_v35 = vpop.eup %196  ;;  %v157_v36 = vand.u32 2147483647, %v195_v30 }
 0x127   :  { %v142_v39 = vmul.f32 0.5, %v197_v35 }
 0x128   :  { %198 = vlog2.f32 %v151_v31  ;;  %v155_v34 = vadd.f32 1.0, %v154_v32  ;;  %vm158_vm1 = vcmp.lt.f32.partialorder %v157_v36, 0.0004427343 }
 0x129   :  { %v143_v45 = vadd.f32 0.5, %v142_v39 }
 0x12a   :  { %v156_v41 = vmul.f32 %v195_v30, %v155_v34 }
 0x12e   :  { %v199_v37 = vpop.eup %198 }
 0x12f   :  { %v153_v40 = vmul.f32 0.6931472, %v199_v37 }
 0x131   :  { %v159_v43 = vsel %vm158_vm1, %v156_v41, %v153_v40 }
 0x132   :  { %v160_v44 = vadd.f32 %v159_v43, %v144_v42 }
 0x134   :  { %v161_v46 = vsel %vm145_vm3, %v136_v25, %v160_v44 }
 0x135   :  { %v163_v47 = vsel %vm162_vm2, %v143_v45, %v161_v46 }
 0x136   :  { %164 = vst [vmem:[#allocation8] sm:$0xff] %v163_v47 }
 0x137   :  { %175 = dma.vmem_to_hbm [thread:$0]  %s171_s4, 128, %s173_s13, [#allocation4]  }
 0x138   :  { %300 = dma.done.wait [#allocation4], 128  }
 0x139   :  { %301 = vsyncadd [#allocation4], 4294967168 }
 0x13a   :  { %180 = vsyncpa [#allocation3], 1 }
 0x13b   :  { %181 = vsyncpa [#allocation6], 1 }
 0x13c   :  { %182 = vsyncpa [#allocation4], 1 }

</bundles_post_ra>
